<compile_context>
chip_gen: v6e
topology: v6e:2x2x1
jax: 0.10.0
libtpu: 0.0.40
codegen_flags: <defaults>
</compile_context>

<pallas_src>
import functools

import jax
import jax.numpy as jnp
from jax.experimental import pallas as pl
from jax.experimental.pallas import tpu as pltpu


def _attention_shift_kernel(n_segment, x_ref, w_ref, o_ref):
    # x_ref / o_ref: (rows, tile_c) with rows = tb * n_segment (whole segments per block)
    # w_ref: (3, tile_c) per-lane taps [w_prev, w_center, w_next]
    x = x_ref[...]
    w = w_ref[...].astype(jnp.float32)
    rows = x.shape[0]

    # Single upcast; rolls operate on the f32 value (one vcvt instead of three).
    xf = x.astype(jnp.float32)

    # Narrow (rows, 1) boundary masks; jnp.where broadcasts them across lanes.
    t = jax.lax.broadcasted_iota(jnp.int32, (rows, 1), 0) % n_segment
    is_first = t == 0
    is_last = t == (n_segment - 1)

    # x[t-1]: roll down by 1.  x[t+1]: roll by rows-1 (== -1 mod rows; pltpu.roll
    # requires a non-negative shift).  Cross-segment leakage lands exactly on the
    # masked boundary rows and is zeroed.
    x_prev = jnp.where(is_first, 0.0, pltpu.roll(xf, shift=1, axis=0))
    x_next = jnp.where(is_last, 0.0, pltpu.roll(xf, shift=rows - 1, axis=0))

    out = w[0:1, :] * x_prev + w[1:2, :] * xf + w[2:3, :] * x_next
    o_ref[...] = out.astype(o_ref.dtype)


def attention_shift_pallas(x, weight, n_segment, temperature=2.0):
    """x: (nt, c, h, w); weight: (c, 3) float32. Returns same shape/dtype as x."""
    nt, c, h, w = x.shape
    assert nt % n_segment == 0
    n_batch = nt // n_segment
    c_new = c * h * w

    # --- glue: attention-weight normalization (tiny compute, plain JAX) ---
    std = jnp.std(weight, axis=1, keepdims=True, ddof=1)          # torch.std is unbiased
    wn = weight / (std + 1e-6)
    wn = jax.nn.softmax(wn / temperature, axis=1)                 # (c, 3)
    # repeat_interleave over channels by h*w (matches torch.repeat_interleave), taps-first
    w_infl = jnp.repeat(wn, h * w, axis=0).T.astype(jnp.float32)  # (3, c_new)

    # --- flatten to (nt, c_new) and pad lanes to a multiple of 128 (lane-dense stores) ---
    x_k = x.reshape(nt, c_new)
    c_pad = ((c_new + 127) // 128) * 128
    if c_pad != c_new:
        x_k = jnp.pad(x_k, ((0, 0), (0, c_pad - c_new)))
        w_infl = jnp.pad(w_infl, ((0, 0), (0, c_pad - c_new)))

    dtype_bytes = jnp.dtype(x.dtype).itemsize

    # --- generation-aware block budget ---
    try:
        vmem_cap = int(pltpu.get_tpu_info().vmem_capacity_bytes)
    except Exception:
        vmem_cap = 64 << 20  # conservative (v7x-sized)
    if vmem_cap >= (96 << 20):          # v5e / v6e: 128 MiB VMEM -> bigger streaming blocks
        max_block_bytes = 8 << 20
        vmem_cap_limit = 100 << 20
    else:                               # v7x: 64 MiB VMEM per TC -> keep headroom
        max_block_bytes = 4 << 20
        vmem_cap_limit = 48 << 20

    # tile_c: largest multiple of 128 dividing c_pad whose minimal (n_segment-row) block
    # fits the budget; grow lanes before rows (contiguous HBM bursts).
    tile_c = 128
    cand = 128
    while cand <= c_pad:
        if c_pad % cand == 0 and cand * n_segment * dtype_bytes <= max_block_bytes:
            tile_c = cand
        cand += 128

    # rows = tb * n_segment; dtype-aware sublane granularity (8 f32 / 16 bf16 / 32 int8)
    sub_req = {4: 8, 2: 16, 1: 32}.get(dtype_bytes, 8)
    divisors = [d for d in range(1, n_batch + 1) if n_batch % d == 0]
    valid = [d for d in divisors if (d * n_segment) % sub_req == 0 or d == n_batch]
    per_row_block = n_segment * tile_c * dtype_bytes
    fitting = [d for d in valid if d * per_row_block <= max_block_bytes]
    tb = max(fitting) if fitting else min(valid)

    # v7x megacore: keep >= 2 grid steps on a parallel axis when the lane axis has 1 block.
    if (c_pad // tile_c) == 1 and tb == n_batch and n_batch > 1:
        smaller = [d for d in valid if d < n_batch]
        if smaller:
            tb = max(smaller)

    rows = tb * n_segment
    block_bytes = rows * tile_c * dtype_bytes
    # double-buffered x-in + out blocks, plus double-buffered (3, tile_c) f32 weights
    vmem_needed = 2 * 2 * block_bytes + 2 * 3 * tile_c * 4
    vmem_limit = min(max(vmem_needed + (2 << 20), 16 << 20), vmem_cap_limit)

    cost = pl.CostEstimate(
        flops=5 * nt * c_pad,
        transcendentals=0,
        bytes_accessed=2 * nt * c_pad * dtype_bytes + 3 * c_pad * 4,
    )

    # channel-tile axis outer, row-block (batch) axis inner -> weight block index is
    # constant across the inner loop, so its DMA is not repeated every step.
    grid = (c_pad // tile_c, nt // rows)

    out = pl.pallas_call(
        functools.partial(_attention_shift_kernel, n_segment),
        out_shape=jax.ShapeDtypeStruct((nt, c_pad), x.dtype),
        grid_spec=pltpu.PrefetchScalarGridSpec(
            num_scalar_prefetch=0,
            grid=grid,
            in_specs=[
                pl.BlockSpec((rows, tile_c), lambda j, b: (b, j)),
                pl.BlockSpec((3, tile_c), lambda j, b: (0, j)),
            ],
            out_specs=pl.BlockSpec((rows, tile_c), lambda j, b: (b, j)),
        ),
        compiler_params=pltpu.CompilerParams(
            dimension_semantics=("parallel", "parallel"),
            vmem_limit_bytes=vmem_limit,
        ),
        cost_estimate=cost,
    )(x_k, w_infl)

    if c_pad != c_new:
        out = out[:, :c_new]
    return out.reshape(nt, c, h, w)


def _reference_jax(x, weight, n_segment, temperature=2.0):
    nt, c, h, w = x.shape
    n_batch = nt // n_segment
    c_new = c * h * w
    std = jnp.std(weight, axis=1, keepdims=True, ddof=1)
    wn = jax.nn.softmax((weight / (std + 1e-6)) / temperature, axis=1)
    w_infl = jnp.repeat(wn, h * w, axis=0)                        # (c_new, 3)
    xk = x.reshape(n_batch, n_segment, c_new)                     # (b, t, c_new)
    xp = jnp.pad(xk, ((0, 0), (1, 1), (0, 0)))
    out = (w_infl[None, None, :, 0] * xp[:, :-2, :]
           + w_infl[None, None, :, 1] * xp[:, 1:-1, :]
           + w_infl[None, None, :, 2] * xp[:, 2:, :])
    return out.reshape(nt, c, h, w)


if __name__ == "__main__":
    n_segment = 8
    n_batch = 2
    c, h, w = 4, 16, 16
    nt = n_batch * n_segment

    key = jax.random.PRNGKey(0)
    kx, kw = jax.random.split(key)
    x = jax.random.normal(kx, (nt, c, h, w), dtype=jnp.float32)
    # torch.rand -> uniform [0, 1)
    weight = jax.random.uniform(kw, (c, 3), dtype=jnp.float32)

    out = attention_shift_pallas(x, weight, n_segment)
    out = jax.block_until_ready(out)

    ref = _reference_jax(x, weight, n_segment)
    assert out.shape == (nt, c, h, w)
    assert jnp.allclose(out, ref, atol=1e-5, rtol=1e-5)

    print("KERNEL_OK")
</pallas_src>

<mosaic_0001>
module attributes {stable_mosaic.version = 11 : i64} {
  func.func @_attention_shift_kernel(%arg0: i32, %arg1: i32, %arg2: memref<8x1024xf32, #tpu.memory_space<vmem>>, %arg3: memref<3x1024xf32, #tpu.memory_space<vmem>>, %arg4: memref<8x1024xf32, #tpu.memory_space<vmem>>) attributes {dimension_semantics = [#tpu.dimension_semantics<parallel>, #tpu.dimension_semantics<parallel>], iteration_bounds = array<i64: 1, 2>, scalar_prefetch = 0 : i64, scratch_operands = 0 : i64, tpu.core_type = #tpu.core_type<tc>, window_params = [{transform_indices = @transform_0, window_bounds = array<i64: 8, 1024>}, {transform_indices = @transform_1, window_bounds = array<i64: 3, 1024>}, {transform_indices = @transform_2, window_bounds = array<i64: 8, 1024>}]} {
    %c0 = arith.constant 0 : index
    %c0_0 = arith.constant 0 : index
    %0 = vector.load %arg2[%c0, %c0_0] : memref<8x1024xf32, #tpu.memory_space<vmem>>, vector<8x1024xf32>
    %c0_1 = arith.constant 0 : index
    %c0_2 = arith.constant 0 : index
    %1 = vector.load %arg3[%c0_1, %c0_2] : memref<3x1024xf32, #tpu.memory_space<vmem>>, vector<3x1024xf32>
    %2 = tpu.iota {dimensions = array<i32: 0>} : vector<8x1xi32>
    %c8_i32 = arith.constant 8 : i32
    %c0_i32 = arith.constant 0 : i32
    %3 = arith.cmpi eq, %c8_i32, %c0_i32 : i32
    %c1_i32 = arith.constant 1 : i32
    %4 = arith.select %3, %c1_i32, %c8_i32 : i32
    %5 = vector.broadcast %4 : i32 to vector<8x1xi32>
    %6 = arith.remsi %2, %5 : vector<8x1xi32>
    %c0_i32_3 = arith.constant 0 : i32
    %7 = vector.broadcast %c0_i32_3 : i32 to vector<8x1xi32>
    %8 = arith.cmpi ne, %6, %7 : vector<8x1xi32>
    %c0_i32_4 = arith.constant 0 : i32
    %9 = vector.broadcast %c0_i32_4 : i32 to vector<8x1xi32>
    %10 = arith.cmpi slt, %6, %9 : vector<8x1xi32>
    %c0_i32_5 = arith.constant 0 : i32
    %11 = arith.cmpi slt, %4, %c0_i32_5 : i32
    %12 = vector.broadcast %11 : i1 to vector<8x1xi1>
    %13 = vector.broadcast %12 : vector<8x1xi1> to vector<8x1xi1>
    %14 = arith.xori %10, %13 : vector<8x1xi1>
    %15 = arith.andi %14, %8 : vector<8x1xi1>
    %16 = vector.broadcast %4 : i32 to vector<8x1xi32>
    %17 = arith.addi %6, %16 : vector<8x1xi32>
    %18 = arith.select %15, %17, %6 : vector<8x1xi1>, vector<8x1xi32>
    %c0_i32_6 = arith.constant 0 : i32
    %19 = vector.broadcast %c0_i32_6 : i32 to vector<8x1xi32>
    %20 = arith.cmpi eq, %18, %19 : vector<8x1xi32>
    %c7_i32 = arith.constant 7 : i32
    %21 = vector.broadcast %c7_i32 : i32 to vector<8x1xi32>
    %22 = arith.cmpi eq, %18, %21 : vector<8x1xi32>
    %c1_i32_7 = arith.constant 1 : i32
    %23 = tpu.dynamic_rotate %0 by %c1_i32_7 dim 0 : vector<8x1024xf32>, i32 -> vector<8x1024xf32>
    %cst = arith.constant 0.000000e+00 : f32
    %24 = vector.shape_cast %20 : vector<8x1xi1> to vector<8x1xi1>
    %25 = vector.broadcast %24 : vector<8x1xi1> to vector<8x1024xi1>
    %26 = vector.broadcast %cst : f32 to vector<8x1024xf32>
    %27 = arith.select %25, %26, %23 : vector<8x1024xi1>, vector<8x1024xf32>
    %c7_i32_8 = arith.constant 7 : i32
    %28 = tpu.dynamic_rotate %0 by %c7_i32_8 dim 0 : vector<8x1024xf32>, i32 -> vector<8x1024xf32>
    %cst_9 = arith.constant 0.000000e+00 : f32
    %29 = vector.shape_cast %22 : vector<8x1xi1> to vector<8x1xi1>
    %30 = vector.broadcast %29 : vector<8x1xi1> to vector<8x1024xi1>
    %31 = vector.broadcast %cst_9 : f32 to vector<8x1024xf32>
    %32 = arith.select %30, %31, %28 : vector<8x1024xi1>, vector<8x1024xf32>
    %33 = vector.extract_strided_slice %1 {offsets = [0, 0], sizes = [1, 1024], strides = [1, 1]} : vector<3x1024xf32> to vector<1x1024xf32>
    %34 = vector.broadcast %33 : vector<1x1024xf32> to vector<8x1024xf32>
    %35 = arith.mulf %34, %27 : vector<8x1024xf32>
    %36 = vector.extract_strided_slice %1 {offsets = [1, 0], sizes = [1, 1024], strides = [1, 1]} : vector<3x1024xf32> to vector<1x1024xf32>
    %37 = vector.broadcast %36 : vector<1x1024xf32> to vector<8x1024xf32>
    %38 = arith.mulf %37, %0 : vector<8x1024xf32>
    %39 = arith.addf %35, %38 : vector<8x1024xf32>
    %40 = vector.extract_strided_slice %1 {offsets = [2, 0], sizes = [1, 1024], strides = [1, 1]} : vector<3x1024xf32> to vector<1x1024xf32>
    %41 = vector.broadcast %40 : vector<1x1024xf32> to vector<8x1024xf32>
    %42 = arith.mulf %41, %32 : vector<8x1024xf32>
    %43 = arith.addf %39, %42 : vector<8x1024xf32>
    %c0_10 = arith.constant 0 : index
    %c0_11 = arith.constant 0 : index
    %44 = vector.load %arg4[%c0_10, %c0_11] : memref<8x1024xf32, #tpu.memory_space<vmem>>, vector<8x1024xf32>
    tpu.vector_store %arg4[%c0_10, %c0_11], %43 {strides = array<i32>} : memref<8x1024xf32, #tpu.memory_space<vmem>>, vector<8x1024xf32>,
    return
  }
  func.func @transform_0(%arg0: i32, %arg1: i32) -> (i32, i32) {
    %c0_i32 = arith.constant 0 : i32
    return %arg1, %arg0 : i32, i32
  }
  func.func @transform_1(%arg0: i32, %arg1: i32) -> (i32, i32) {
    %c0_i32 = arith.constant 0 : i32
    %c0_i32_0 = arith.constant 0 : i32
    return %c0_i32, %arg0 : i32, i32
  }
  func.func @transform_2(%arg0: i32, %arg1: i32) -> (i32, i32) {
    %c0_i32 = arith.constant 0 : i32
    return %arg1, %arg0 : i32, i32
  }
}

</mosaic_0001>

<bundles_post_ra>
// kernel: tpu_custom_call.1
= control target key start
LH: loop header
LB: loop body
LE: loop exit
PB: predicated region body
PF: predicated region fallthrough
CT: control target
= control target key end

     0   :  { %7 = vsyncpa [#allocation3], 0  ;;  %s1183_s0 = inlined_call_operand.hbm [shape: f32[16,1024], index: 0, kind: input, shape index: {}]   ;;  %s1184_s1 = inlined_call_operand.hbm [shape: f32[3,1024], index: 1, kind: input, shape index: {}]   ;;  %s1185_s2 = inlined_call_operand.hbm [shape: f32[16,1024], index: 2, kind: output, shape index: {}]  }
   0x1   :  { %9 = vsyncpa [#allocation3 + $0x1], 0 }
   0x2   :  { %10 = vsyncpa [#allocation6], 0 }
   0x3   :  { %11 = vsyncpa [#allocation4], 0 }
   0x4   :  { %13 = vsyncpa [#allocation4 + $0x1], 0  ;;  %s897_s9 = smov 0   ;;  %s899_s10 = smov 0  }
   0x5   :  { %s901_s11 = smov 0   ;;  %s903_s12 = smov 0  }
   0x6   :  { %s905_s13 = smov 0   ;;  %s907_s14 = smov 0  }
   0x7 LB: > { %s647_s15 = sadd.s32 4294967295, %s877_s14   ;;  %s648_s16 = sadd.s32 4294967294, %s877_s14   ;;  %s877_s14 = sphi %s907_s14, %s19_s14   ;;  %s873_s13 = sphi %s905_s13, %s1206_s13   ;;  %s869_s12 = sphi %s903_s12, %s1205_s12   ;;  %s865_s11 = sphi %s901_s11, %s1204_s11   ;;  %s861_s10 = sphi %s899_s10, %s1203_s10   ;;  %s857_s9 = sphi %s897_s9, %s1202_s9  }
   0x8   : > { %p53_p0 = scmp.ne.s32.totalorder %s861_s10, %s857_s9  ;;  %p931_p1 = scmp.eq.s32.totalorder %s647_s15, 0 }
   0x9   : > { %p935_p2 = scmp.eq.s32.totalorder %s647_s15, 1  ;;  %p111_p3 = scmp.eq.s32.totalorder %s648_s16, 1 }
   0xa   : > { %p941_p4 = por %p931_p1, %p53_p0  ;;  %p649_p5 = scmp.ge.s32.totalorder %s877_s14, 1 }
   0xb   : > { %p946_p6 = por %p111_p3, %p53_p0  ;;  %p118_p7 = scmp.lt.s32.totalorder %s877_s14, 3 }
   0xc   : > { %s1189_s19 = scalar_select %p941_p4, 1, 0 }
   0xd   : > { %s1190_s20 = scalar_select %p946_p6, 1, 0 }
   0xe   : > { %p951_p8 = pnand %p649_p5, %p118_p7  ;;  %s879_s22 = smov [#allocation5]  }
   0xf   : > { %s134_s23 = sshll.u32 %s879_s22, 4  ;;  %s28_s25 = sadd.s32 1, %s873_s13  ;;  %s135_s23 = int_to_ptr.vmem [resolvable:$true] %s134_s23 }
  0x10   : > { %p674_p10 = pneg %p951_p8  ;;  %s40_s26 = sadd.s32 1, %s865_s11 }
  0x11   : > { %p29_p12 = scmp.ge.s32.totalorder %s28_s25, 2  ;;  %s750_s27 = scalar_lea.vmem %s135_s23, 512 }
  0x12   : > { %p960_p11 = pnand %p674_p10, %p931_p1  ;;  %p751_p0 = scmp.ne.s32.totalorder %s135_s23, %s750_s27 }
  0x13   : > { %p758_p7 = scmp.lt.s32.totalorder %s135_s23, %s135_s23  ;;  %p759_p6 = scmp.lt.s32.totalorder %s750_s27, %s750_s27 }
  0x14   : > { %p741_p13 = pneg %p960_p11 }
  0x15   : > { %p760_p9 = por %p759_p6, %p758_p7 }
  0x16   : > { %p753_p3 = pnand %p751_p0, %p741_p13 }
  0x18   : > { %p754_p5 = pneg %p753_p3 }
  0x1a   : > { %p761_p4 = pnand %p760_p9, %p754_p5 }
  0x1c   : > { %764 = shalt.err (!%p761_p4)
}
  0x1d   : > { %677 = dma.hbm_to_vmem [thread:$0]  (!%p960_p11), %s1184_s1, 512, %s135_s23, [#allocation6]  }
  0x1e   : > { %s1208_s25 = smov (%p29_p12, %s28_s25), 0  ;;  %p47_p6 = scmp.ne.s32.totalorder %s865_s11, %s861_s10 }
  0x1f   : > { %p48_p4 = scmp.eq.s32.totalorder %s877_s14, 0  ;;  %s35_s30 = ssub.s32 %s873_s13, %s1208_s25 }
  0x20   : > { %p687_p9 = scmp.lt.s32.totalorder %s877_s14, 2  ;;  %p38_p10 = scmp.eq.s32.totalorder %s35_s30, 0 }
  0x21   : > { %p49_p13 = por %p48_p4, %p47_p6  ;;  %p983_p0 = por %p935_p2, %p47_p6 }
  0x22   : > { %s145_s4 = sand.u32 1, %s865_s11   ;;  %s664_s7 = sshll.u32 %s873_s13, 10 }
  0x23   : > { %s989_s5 = scalar_select %p38_p10, %s865_s11, %s40_s26  }
  0x24   : > { %s652_s6 = sshll.u32 %s145_s4, 6  ;;  %s157_s16 = scalar_lea.hbm %s1183_s0, %s664_s7 }
  0x25   : > { %s149_s22 = scalar_lea.vmem [#allocation2], %s652_s6  ;;  %p995_p11 = pnand %p687_p9, %p49_p13 }
  0x26   : > { %s159_s23 = sshll.u32 %s149_s22, 4  ;;  %s146_s18 = scalar_lea.sflag [#allocation3], %s145_s4  ;;  %s160_s23 = int_to_ptr.vmem [resolvable:$true] %s159_s23 }
  0x27   : > { %p767_p2 = pneg %p995_p11  ;;  %s778_s27 = scalar_lea.vmem %s160_s23, 1024 }
  0x28   : > { %p779_p12 = scmp.ne.s32.totalorder %s160_s23, %s778_s27  ;;  %s880_s26 = smov [#allocation2]  }
  0x29   : > { %s783_s28 = sshll.u32 %s880_s26, 4  ;;  %s784_s28 = int_to_ptr.vmem [resolvable:$false] %s783_s28 }
  0x2a   : > { %p781_p3 = pnand %p779_p12, %p767_p2  ;;  %s785_s29 = scalar_lea.vmem %s784_s28, 2048 }
  0x2b   : > { %p786_p7 = scmp.lt.s32.totalorder %s160_s23, %s784_s28  ;;  %p787_p6 = scmp.lt.s32.totalorder %s785_s29, %s778_s27 }
  0x2c   : > { %p782_p5 = pneg %p781_p3 }
  0x2d   : > { %p788_p4 = por %p787_p6, %p786_p7 }
  0x2f   : > { %p789_p10 = pnand %p788_p4, %p782_p5 }
  0x31   : > { %792 = shalt.err (!%p789_p10)
}
  0x32   : > { %681 = dma.hbm_to_vmem [thread:$0]  (!%p995_p11), %s157_s16, 1024, %s160_s23, %s146_s18  }
  0x33   : > { %168 = sbr.rel (%p951_p8) target bundleno = 112 (0x70), region = 28  ;;  %s1006_s30 = sand.u32 (!%p951_p8), 1, %s861_s10  }
  0x34   : > { %s656_s4 = sshll.u32 (!%p951_p8), %s1006_s30, 6  ;;  %s171_s6 = scalar_lea.sflag (!%p951_p8), [#allocation3], %s1006_s30 }
  0x35   : > { %s1012_s7 = scalar_lea.vmem (!%p951_p8), [#allocation2], %s656_s4  ;;  %p1195_p9 = scmp.ne.s32.totalorder (!%p951_p8), %s1189_s19, 0 }
  0x38   : > { %844 = dma.done.wait (%p1195_p9), %s171_s6, 1024  }
  0x39   : > { %846 = vsyncadd (%p1195_p9), %s171_s6, 4294966272 }
  0x3a   : > { %848 = dma.done.wait (%p931_p1), [#allocation6], 512  }
  0x3b   : > { %850 = vsyncadd (%p931_p1), [#allocation6], 4294966784  ;;  %v214_v0 = vlaneseq  ;;  %v202_v9 = vld [vmem:[%s1012_s7] sm:$0xff]  ;;  %v203_v13 = vld [vmem:[%s1012_s7 + $0x8] sm:$0xff]  ;;  %s1078_s17 = scalar_lea.vmem [#allocation7], %s656_s4  ;;  %s665_s19 = sshll.u32 %s869_s12, 10 }
  0x3c   : > { %v210_v10 = vld [vmem:[#allocation5] sm:$0x77]  ;;  %v230_v14 = vrot.slane %v202_v9, 7  ;;  %v248_v15 = vrot.slane %v202_v9, 1  ;;  %v231_v19 = vrot.slane %v203_v13, 7  ;;  %v249_v20 = vrot.slane %v203_v13, 1  ;;  %s549_s16 = scalar_lea.hbm %s1185_s2, %s665_s19 }
  0x3d   : > { %v215_v1 = vshrl.u32 %v214_v0, 7  ;;  %v204_v26 = vld [vmem:[%s1012_s7 + $0x10] sm:$0xff]  ;;  %v211_v31 = vld [vmem:[#allocation5 + $0x8] sm:$0x77]  ;;  %v205_v44 = vld [vmem:[%s1012_s7 + $0x18] sm:$0xff]  ;;  %s551_s21 = sshll.u32 %s1078_s17, 4  ;;  %s552_s21 = int_to_ptr.vmem [resolvable:$true] %s551_s21 }
  0x3e   : > { %v232_v38 = vrot.slane %v204_v26, 7  ;;  %v250_v39 = vrot.slane %v204_v26, 1  ;;  %v233_v55 = vrot.slane %v205_v44, 7  ;;  %v251_v56 = vrot.slane %v205_v44, 1  ;;  %v206_v61 = vld [vmem:[%s1012_s7 + $0x20] sm:$0xff]  ;;  %s535_s22 = scalar_lea.sflag [#allocation4], %s1006_s30 }
  0x3f   : > { %v220_v2 = vand.u32 7, %v215_v1  ;;  %v1022_v3 = vsub.s32 0, %v215_v1  ;;  %v1024_v4 = vsub.s32 1, %v215_v1  ;;  %v1026_v5 = vsub.s32 2, %v215_v1  ;;  %v212_v62 = vld [vmem:[#allocation5 + $0x10] sm:$0x77] }
  0x40   : > { %v1028_v6 = vsub.s32 4, %v215_v1  ;;  %v1030_v7 = vsub.s32 5, %v215_v1  ;;  %v1032_v8 = vsub.s32 6, %v215_v1  ;;  %s793_s23 = scalar_lea.vmem %s552_s21, 1024  ;;  %s881_s24 = smov [#allocation7]  }
  0x41   : > { %vm1035_vm0 = vcmp.eq.s32.totalorder %v220_v2, 0  ;;  %vm1039_vm1 = vcmp.eq.s32.totalorder %v220_v2, 7  ;;  %v273_v16 = vrot.slane %v210_v10, %v1022_v3  ;;  %v353_v17 = vrot.slane %v210_v10, %v1024_v4  ;;  %p794_p1 = scmp.ne.s32.totalorder %s552_s21, %s793_s23  ;;  %s797_s18 = sshll.u32 %s881_s24, 4  ;;  %s798_s18 = int_to_ptr.vmem [resolvable:$false] %s797_s18 }
  0x42   : > { %v441_v18 = vrot.slane %v210_v10, %v1026_v5  ;;  %v277_v21 = vrot.slane %v210_v10, %v1028_v6  ;;  %v240_v22 = vsel %vm1035_vm0, 0.0, %v230_v14  ;;  %v258_v23 = vsel %vm1039_vm1, 0.0, %v248_v15  ;;  %s799_s12 = scalar_lea.vmem %s798_s18, 2048  ;;  %p800_p11 = scmp.lt.s32.totalorder %s552_s21, %s798_s18 }
  0x43   : > { %v313_v24 = vrot.slane %v273_v16, %v1022_v3  ;;  %v393_v25 = vrot.slane %v353_v17, %v1024_v4  ;;  %v241_v28 = vsel %vm1035_vm0, 0.0, %v231_v19  ;;  %v259_v29 = vsel %vm1039_vm1, 0.0, %v249_v20  ;;  %p795_p8 = pnand %p794_p1, %p983_p0  ;;  %p801_p2 = scmp.lt.s32.totalorder %s799_s12, %s793_s23 }
  0x44   : > { %v481_v27 = vrot.slane %v441_v18, %v1026_v5  ;;  %v317_v30 = vrot.slane %v277_v21, %v1022_v3  ;;  %v357_v34 = vrot.slane %v210_v10, %v1030_v7  ;;  %v445_v35 = vrot.slane %v210_v10, %v1032_v8 }
  0x45   : > { %v342_v32 = vmul.f32 %v313_v24, %v240_v22  ;;  %v422_v33 = vmul.f32 %v393_v25, %v202_v9  ;;  %v281_v43 = vrot.slane %v211_v31, %v1022_v3  ;;  %v242_v45 = vsel %vm1035_vm0, 0.0, %v232_v38  ;;  %p796_p13 = pneg %p795_p8  ;;  %p802_p12 = por %p801_p2, %p800_p11 }
  0x46   : > { %v510_v36 = vmul.f32 %v481_v27, %v258_v23  ;;  %v343_v37 = vmul.f32 %v317_v30, %v241_v28  ;;  %v397_v41 = vrot.slane %v357_v34, %v1024_v4  ;;  %v485_v42 = vrot.slane %v445_v35, %v1026_v5  ;;  %v207_v23 = vld [vmem:[%s1012_s7 + $0x28] sm:$0xff] }
  0x47   : > { %v430_v40 = vadd.f32 %v422_v33, %v342_v32  ;;  %v260_v46 = vsel %vm1039_vm1, 0.0, %v250_v39  ;;  %v361_v47 = vrot.slane %v211_v31, %v1024_v4  ;;  %v449_v48 = vrot.slane %v211_v31, %v1026_v5  ;;  %p803_p3 = pnand %p802_p12, %p796_p13 }
  0x48   : > { %v423_v50 = vmul.f32 %v397_v41, %v203_v13  ;;  %v511_v51 = vmul.f32 %v485_v42, %v259_v29  ;;  %v321_v52 = vrot.slane %v281_v43, %v1022_v3  ;;  %v285_v59 = vrot.slane %v211_v31, %v1028_v6  ;;  %v213_v41 = vld [vmem:[#allocation5 + $0x18] sm:$0x77] }
  0x49   : > { %v518_v49 = vadd.f32 %v510_v36, %v430_v40  ;;  %v401_v53 = vrot.slane %v361_v47, %v1024_v4  ;;  %v489_v54 = vrot.slane %v449_v48, %v1026_v5  ;;  %v365_v60 = vrot.slane %v211_v31, %v1030_v7  ;;  %v208_v36 = vld [vmem:[%s1012_s7 + $0x30] sm:$0xff] }
  0x4a   : > { %v431_v57 = vadd.f32 %v423_v50, %v343_v37  ;;  %v344_v58 = vmul.f32 %v321_v52, %v242_v45  ;;  %v243_v1 = vsel %vm1035_vm0, 0.0, %v233_v55  ;;  %v261_v2 = vsel %vm1039_vm1, 0.0, %v251_v56 }
  0x4b   : > { %526 = vst [vmem:[%s1078_s17] sm:$0xff] %v518_v49  ;;  %v424_v63 = vmul.f32 %v401_v53, %v204_v26  ;;  %v512_v0 = vmul.f32 %v489_v54, %v260_v46  ;;  %v325_v10 = vrot.slane %v285_v59, %v1022_v3  ;;  %v405_v13 = vrot.slane %v365_v60, %v1024_v4  ;;  %v209_v54 = vld [vmem:[%s1012_s7 + $0x38] sm:$0xff] }
  0x4c   : > { %v519_v9 = vadd.f32 %v511_v51, %v431_v57  ;;  %v453_v14 = vrot.slane %v211_v31, %v1032_v8  ;;  %v234_v16 = vrot.slane %v206_v61, 7  ;;  %v252_v17 = vrot.slane %v206_v61, 1 }
  0x4d   : > { %v432_v15 = vadd.f32 %v424_v63, %v344_v58  ;;  %v289_v18 = vrot.slane %v212_v62, %v1022_v3  ;;  %v345_v19 = vmul.f32 %v325_v10, %v243_v1  ;;  %v425_v20 = vmul.f32 %v405_v13, %v205_v44 }
  0x4e   : > { %527 = vst [vmem:[%s1078_s17 + $0x8] sm:$0xff] %v519_v9  ;;  %v493_v21 = vrot.slane %v453_v14, %v1026_v5  ;;  %v369_v22 = vrot.slane %v212_v62, %v1024_v4  ;;  %v244_v25 = vsel %vm1035_vm0, 0.0, %v234_v16  ;;  %v262_v26 = vsel %vm1039_vm1, 0.0, %v252_v17 }
  0x4f   : > { %v520_v24 = vadd.f32 %v512_v0, %v432_v15  ;;  %v329_v27 = vrot.slane %v289_v18, %v1022_v3  ;;  %v433_v28 = vadd.f32 %v425_v20, %v345_v19  ;;  %v457_v31 = vrot.slane %v212_v62, %v1026_v5 }
  0x50   : > { %v513_v29 = vmul.f32 %v493_v21, %v261_v2  ;;  %v409_v30 = vrot.slane %v369_v22, %v1024_v4  ;;  %v235_v33 = vrot.slane %v207_v23, 7  ;;  %v253_v34 = vrot.slane %v207_v23, 1 }
  0x51   : > { %528 = vst [vmem:[%s1078_s17 + $0x10] sm:$0xff] %v520_v24  ;;  %v346_v32 = vmul.f32 %v329_v27, %v244_v25  ;;  %v293_v35 = vrot.slane %v212_v62, %v1028_v6  ;;  %v497_v39 = vrot.slane %v457_v31, %v1026_v5  ;;  %v373_v40 = vrot.slane %v212_v62, %v1030_v7 }
  0x52   : > { %v521_v37 = vadd.f32 %v513_v29, %v433_v28  ;;  %v426_v38 = vmul.f32 %v409_v30, %v206_v61  ;;  %v245_v42 = vsel %vm1035_vm0, 0.0, %v235_v33  ;;  %v263_v43 = vsel %vm1039_vm1, 0.0, %v253_v34 }
  0x53   : > { %v333_v44 = vrot.slane %v293_v35, %v1022_v3  ;;  %v461_v45 = vrot.slane %v212_v62, %v1032_v8  ;;  %v514_v47 = vmul.f32 %v497_v39, %v262_v26  ;;  %v413_v48 = vrot.slane %v373_v40, %v1024_v4 }
  0x54   : > { %529 = vst [vmem:[%s1078_s17 + $0x18] sm:$0xff] %v521_v37  ;;  %v434_v46 = vadd.f32 %v426_v38, %v346_v32  ;;  %v236_v49 = vrot.slane %v208_v36, 7  ;;  %v254_v52 = vrot.slane %v208_v36, 1  ;;  %v297_v53 = vrot.slane %v213_v41, %v1022_v3 }
  0x55   : > { %v347_v50 = vmul.f32 %v333_v44, %v245_v42  ;;  %v501_v51 = vrot.slane %v461_v45, %v1026_v5  ;;  %v427_v56 = vmul.f32 %v413_v48, %v207_v23  ;;  %v377_v58 = vrot.slane %v213_v41, %v1024_v4 }
  0x56   : > { %v522_v55 = vadd.f32 %v514_v47, %v434_v46  ;;  %v246_v57 = vsel %vm1035_vm0, 0.0, %v236_v49  ;;  %v264_v60 = vsel %vm1039_vm1, 0.0, %v254_v52  ;;  %v337_v61 = vrot.slane %v297_v53, %v1022_v3 }
  0x57   : > { %v515_v59 = vmul.f32 %v501_v51, %v263_v43  ;;  %v465_v62 = vrot.slane %v213_v41, %v1026_v5  ;;  %v435_v63 = vadd.f32 %v427_v56, %v347_v50  ;;  %v417_v0 = vrot.slane %v377_v58, %v1024_v4 }
  0x58   : > { %530 = vst [vmem:[%s1078_s17 + $0x20] sm:$0xff] %v522_v55  ;;  %v237_v1 = vrot.slane %v209_v54, 7  ;;  %v255_v2 = vrot.slane %v209_v54, 1  ;;  %v348_v9 = vmul.f32 %v337_v61, %v246_v57  ;;  %v301_v13 = vrot.slane %v213_v41, %v1028_v6 }
  0x59   : > { %v505_v10 = vrot.slane %v465_v62, %v1026_v5  ;;  %v381_v14 = vrot.slane %v213_v41, %v1030_v7  ;;  %v523_v15 = vadd.f32 %v515_v59, %v435_v63  ;;  %v428_v16 = vmul.f32 %v417_v0, %v208_v36 }
  0x5a   : > { %v247_v17 = vsel %vm1035_vm0, 0.0, %v237_v1  ;;  %v341_v19 = vrot.slane %v301_v13, %v1022_v3  ;;  %v469_v21 = vrot.slane %v213_v41, %v1032_v8  ;;  %v265_v7 = vsel %vm1039_vm1, 0.0, %v255_v2 }
  0x5b   : > { %v516_v18 = vmul.f32 %v505_v10, %v264_v60  ;;  %v421_v20 = vrot.slane %v381_v14, %v1024_v4  ;;  %531 = vst [vmem:[%s1078_s17 + $0x28] sm:$0xff] %v523_v15  ;;  %v436_v6 = vadd.f32 %v428_v16, %v348_v9 }
  0x5c   : > { %v349_v22 = vmul.f32 %v341_v19, %v247_v17  ;;  %v509_v11 = vrot.slane %v469_v21, %v1026_v5 }
  0x5d   : > { %v429_v23 = vmul.f32 %v421_v20, %v209_v54  ;;  %v524_v24 = vadd.f32 %v516_v18, %v436_v6 }
  0x5e   : > { %v517_v25 = vmul.f32 %v509_v11, %v265_v7 }
  0x5f   : > { %v437_v3 = vadd.f32 %v429_v23, %v349_v22  ;;  %532 = vst [vmem:[%s1078_s17 + $0x30] sm:$0xff] %v524_v24 }
  0x61   : > { %v525_v4 = vadd.f32 %v517_v25, %v437_v3 }
  0x63   : > { %533 = vst [vmem:[%s1078_s17 + $0x38] sm:$0xff] %v525_v4 }
  0x64   : > { %806 = shalt.err (!%p803_p3)
}
  0x65   : > { %s807_s27 = scalar_lea.hbm %s549_s16, 1024  ;;  %s811_s29 = scalar_lea.hbm %s1185_s2, 2048 }
  0x66   : > { %p808_p5 = scmp.ne.s32.totalorder %s549_s16, %s807_s27  ;;  %p812_p4 = scmp.lt.s32.totalorder %s549_s16, %s1185_s2 }
  0x67   : > { %p813_p10 = scmp.lt.s32.totalorder %s811_s29, %s807_s27 }
  0x68   : > { %p809_p7 = pnand %p808_p5, %p983_p0 }
  0x69   : > { %p814_p9 = por %p813_p10, %p812_p4 }
  0x6a   : > { %p810_p6 = pneg %p809_p7 }
  0x6c   : > { %p815_p1 = pnand %p814_p9, %p810_p6 }
  0x6e   : > { %818 = shalt.err (!%p815_p1)
}
  0x6f   : > { %672 = dma.vmem_to_hbm [thread:$0]  (%p983_p0), %s552_s21, 1024, %s549_s16, %s535_s22  }
  0x70 PF: > { %s563_s6 = sand.u32 1, %s857_s9   ;;  %p1200_p8 = scmp.ne.s32.totalorder %s1190_s20, 0 }
  0x71   : > { %p1201_p13 = scmp.ge.s32.totalorder %s877_s14, 2  ;;  %s564_s7 = scalar_lea.sflag [#allocation4], %s563_s6 }
  0x73   : > { %p683_p11 = pnand %p1201_p13, %p1200_p8 }
  0x75   : > { %p684_p2 = pneg %p683_p11 }
  0x77   : > { %852 = dma.done.wait (%p684_p2), %s564_s7, 1024  }
  0x78   : > { %854 = vsyncadd (%p684_p2), %s564_s7, 4294966272  ;;  %s19_s14 = sadd.s32 1, %s877_s14   ;;  %s1202_s9 = smov %s861_s10 }
  0x79   : > { %p16_p12 = scmp.ge.s32.totalorder %s19_s14, 4   ;;  %s1203_s10 = smov %s865_s11 }
  0x7a   : > { %s1204_s11 = smov %s989_s5  ;;  %s1205_s12 = smov %s873_s13 }
  0x7b   : > { %s1206_s13 = smov %s1208_s25  ;;  %18 = sbr.rel (!%p16_p12) target bundleno = 7 (0x7), region = 78 }
  0x80   :  { %569 = vsyncpa [#allocation3], 1 }
  0x81   :  { %571 = vsyncpa [#allocation3 + $0x1], 1 }
  0x82   :  { %572 = vsyncpa [#allocation6], 1 }
  0x83   :  { %573 = vsyncpa [#allocation4], 1 }
  0x84   :  { %575 = vsyncpa [#allocation4 + $0x1], 1 }

</bundles_post_ra>
